<compile_context>
chip_gen: v6e
topology: v6e:2x2x1
jax: 0.10.0
libtpu: 0.0.40
codegen_flags: <defaults>
</compile_context>

<pallas_src>
import functools

import jax
import jax.numpy as jnp
from jax.experimental import pallas as pl
from jax.experimental.pallas import tpu as pltpu


def fused_affine_kernel(w_ref, b_ref, x_ref, out_ref):
    # out tile (tile_b, S) = x tile (tile_b, S) @ W_total (S, S) + b_total.
    acc = jnp.dot(x_ref[...], w_ref[...], preferred_element_type=jnp.float32)
    out_ref[...] = (acc + b_ref[...]).astype(out_ref.dtype)


def fold_affine(params):
    """Fold a chain of Linears (y = x @ W + b) into one (W_total, b_total)."""
    w_total, b_total = params[0]
    w_total = w_total.astype(jnp.float32)
    b_total = b_total.reshape(1, -1).astype(jnp.float32)
    for w, b in params[1:]:
        w_total = jnp.dot(w_total, w, precision=jax.lax.Precision.HIGHEST)
        b_total = (
            jnp.dot(b_total, w, precision=jax.lax.Precision.HIGHEST)
            + b.reshape(1, -1)
        )
    return w_total, b_total


def _round_up(x, m):
    return ((x + m - 1) // m) * m


def _pick_tile_b(batch, max_tile_b):
    """Batch-tile rows: big to amortize per-step overhead, multiple of 8
    (sublane) unless it equals the full batch, and >=2 grid steps for large
    batches so v7x's second TensorCore has work."""
    max_tile_b = max(8, (max_tile_b // 8) * 8)
    if batch > max_tile_b:
        return max_tile_b
    if batch > 1024:
        return min(max_tile_b, _round_up(pl.cdiv(batch, 2), 8))
    return batch


def autoencoder_forward(x, params, *, max_tile_b=8192, compute_dtype=None):
    """x: (B, state_dim).  params: list of (W_(in,out), b_(1,out)) for the 4
    Linears.  compute_dtype=None -> use x.dtype (no extra cast pass); pass
    bf16 activations to halve HBM traffic in this memory-bound regime."""
    B, state_dim = x.shape
    if compute_dtype is None:
        compute_dtype = x.dtype

    w_total, b_total = fold_affine(params)                  # (S, S), (1, S) f32
    w = w_total.astype(compute_dtype)
    b = b_total                                             # stays f32 (post-acc add)
    x_in = x if x.dtype == compute_dtype else x.astype(compute_dtype)

    tile_b = _pick_tile_b(B, max_tile_b)
    grid = (pl.cdiv(B, tile_b),)

    weight_spec = pl.BlockSpec((state_dim, state_dim), lambda i: (0, 0))
    bias_spec = pl.BlockSpec((1, state_dim), lambda i: (0, 0))
    act_spec = pl.BlockSpec((tile_b, state_dim), lambda i: (i, 0))

    itemsize = jnp.dtype(compute_dtype).itemsize
    cost = pl.CostEstimate(
        flops=2 * B * state_dim * state_dim + B * state_dim,
        transcendentals=0,
        bytes_accessed=B * state_dim * (itemsize + jnp.dtype(x.dtype).itemsize)
        + state_dim * state_dim * itemsize,
    )

    out = pl.pallas_call(
        fused_affine_kernel,
        out_shape=jax.ShapeDtypeStruct((B, state_dim), x.dtype),
        grid=grid,
        in_specs=[weight_spec, bias_spec, act_spec],
        out_specs=act_spec,
        compiler_params=pltpu.CompilerParams(
            dimension_semantics=("parallel",),      # v7x: 2 TCs share the batch grid
            vmem_limit_bytes=32 * 1024 * 1024,      # safe on v7x (64 MiB physical)
        ),
        cost_estimate=cost,
    )(w, b, x_in)

    return out


def init_linear(key, in_dim, out_dim):
    """Deterministic PyTorch-style uniform init; weight stored as (in, out)."""
    kw, kb = jax.random.split(key)
    bound = 1.0 / jnp.sqrt(in_dim)
    w = jax.random.uniform(kw, (in_dim, out_dim), jnp.float32, -bound, bound)
    b = jax.random.uniform(kb, (1, out_dim), jnp.float32, -bound, bound)
    return w, b


if __name__ == "__main__":
    # Shapes consistent with the module defaults.
    batch = 8
    state_dim = 16
    encoded_dim = 8
    hidden = 32  # encoder_hidden_layers_size / decoder_hidden_layer_size

    root = jax.random.PRNGKey(0)
    kx1, kx2, kx3, kx4, k1, k2, k3, k4 = jax.random.split(root, 8)

    params = [
        init_linear(k1, state_dim, hidden),       # encoder layer 0
        init_linear(k2, hidden, encoded_dim),     # encoder layer 1
        init_linear(k3, encoded_dim, hidden),     # decoder layer 0
        init_linear(k4, hidden, state_dim),       # decoder layer 1
    ]

    def reference(xv):
        r = xv
        for w_, b_ in params:
            r = r @ w_ + b_
        return r

    # Whole forward (fold + prep + kernel) under one jit -> tiny fold matmuls
    # are constant-folded / fused instead of dispatched per call.
    fwd = jax.jit(functools.partial(autoencoder_forward, params=params))
    fwd_small_tiles = jax.jit(
        functools.partial(autoencoder_forward, params=params, max_tile_b=128)
    )

    # 1) Small-shape check (single grid step, block == full array).
    x_small = jax.random.normal(kx1, (batch, state_dim), jnp.float32)
    out_small = jax.block_until_ready(fwd(x_small))
    assert out_small.shape == (batch, state_dim)
    assert jnp.allclose(out_small, reference(x_small), atol=1e-4, rtol=1e-4)

    # 2) Larger batch exercising the >=2-step batch grid (v7x megacore path).
    x_big = jax.random.normal(kx2, (2048, state_dim), jnp.float32)
    out_big = jax.block_until_ready(fwd(x_big))
    assert out_big.shape == (2048, state_dim)
    assert jnp.allclose(out_big, reference(x_big), atol=1e-4, rtol=1e-4)

    # 3) Partial last tile (B not a multiple of tile_b): OOB pad/discard path.
    x_odd = jax.random.normal(kx3, (1000, state_dim), jnp.float32)
    out_odd = jax.block_until_ready(fwd_small_tiles(x_odd))
    assert out_odd.shape == (1000, state_dim)
    assert jnp.allclose(out_odd, reference(x_odd), atol=1e-4, rtol=1e-4)

    # 4) bf16 activations (half the HBM bytes); f32 accumulation in-kernel.
    x_bf16 = jax.random.normal(kx4, (512, state_dim), jnp.float32).astype(jnp.bfloat16)
    out_bf16 = jax.block_until_ready(fwd(x_bf16))
    assert out_bf16.dtype == jnp.bfloat16
    ref_bf16 = reference(x_bf16.astype(jnp.float32))
    assert jnp.allclose(out_bf16.astype(jnp.float32), ref_bf16, atol=5e-2, rtol=5e-2)

    print("KERNEL_OK")
</pallas_src>

<mosaic_0001>
module attributes {stable_mosaic.version = 11 : i64} {
  func.func @fused_affine_kernel(%arg0: i32, %arg1: memref<16x16xf32, #tpu.memory_space<vmem>>, %arg2: memref<1x16xf32, #tpu.memory_space<vmem>>, %arg3: memref<8x16xf32, #tpu.memory_space<vmem>>, %arg4: memref<8x16xf32, #tpu.memory_space<vmem>>) attributes {dimension_semantics = [#tpu.dimension_semantics<parallel>], iteration_bounds = array<i64: 1>, scalar_prefetch = 0 : i64, scratch_operands = 0 : i64, tpu.core_type = #tpu.core_type<tc>, window_params = [{pipeline_mode = #tpu.pipeline_mode<synchronous>, transform_indices = @transform_0, window_bounds = array<i64: 16, 16>}, {pipeline_mode = #tpu.pipeline_mode<synchronous>, transform_indices = @transform_1, window_bounds = array<i64: 1, 16>}, {transform_indices = @transform_2, window_bounds = array<i64: 8, 16>}, {transform_indices = @transform_3, window_bounds = array<i64: 8, 16>}]} {
    %c0 = arith.constant 0 : index
    %c0_0 = arith.constant 0 : index
    %0 = vector.load %arg3[%c0, %c0_0] : memref<8x16xf32, #tpu.memory_space<vmem>>, vector<8x16xf32>
    %c0_1 = arith.constant 0 : index
    %c0_2 = arith.constant 0 : index
    %1 = vector.load %arg1[%c0_1, %c0_2] : memref<16x16xf32, #tpu.memory_space<vmem>>, vector<16x16xf32>
    %cst = arith.constant dense<0.000000e+00> : vector<8x16xf32>
    %2 = tpu.matmul %0, %1, %cst {dimension_numbers = #tpu.dot_dimension_numbers<[1], [0], [0], [1], [0, 0, 1, 1], [], []>} : vector<8x16xf32>, vector<16x16xf32>, vector<8x16xf32> -> vector<8x16xf32>
    %c0_3 = arith.constant 0 : index
    %c0_4 = arith.constant 0 : index
    %3 = vector.load %arg2[%c0_3, %c0_4] : memref<1x16xf32, #tpu.memory_space<vmem>>, vector<1x16xf32>
    %4 = vector.broadcast %3 : vector<1x16xf32> to vector<8x16xf32>
    %5 = arith.addf %2, %4 : vector<8x16xf32>
    %c0_5 = arith.constant 0 : index
    %c0_6 = arith.constant 0 : index
    %6 = vector.load %arg4[%c0_5, %c0_6] : memref<8x16xf32, #tpu.memory_space<vmem>>, vector<8x16xf32>
    tpu.vector_store %arg4[%c0_5, %c0_6], %5 {strides = array<i32>} : memref<8x16xf32, #tpu.memory_space<vmem>>, vector<8x16xf32>,
    return
  }
  func.func @transform_0(%arg0: i32) -> (i32, i32) {
    %c0_i32 = arith.constant 0 : i32
    %c0_i32_0 = arith.constant 0 : i32
    %c0_i32_1 = arith.constant 0 : i32
    return %c0_i32, %c0_i32_0 : i32, i32
  }
  func.func @transform_1(%arg0: i32) -> (i32, i32) {
    %c0_i32 = arith.constant 0 : i32
    %c0_i32_0 = arith.constant 0 : i32
    %c0_i32_1 = arith.constant 0 : i32
    return %c0_i32, %c0_i32_0 : i32, i32
  }
  func.func @transform_2(%arg0: i32) -> (i32, i32) {
    %c0_i32 = arith.constant 0 : i32
    %c0_i32_0 = arith.constant 0 : i32
    return %arg0, %c0_i32 : i32, i32
  }
  func.func @transform_3(%arg0: i32) -> (i32, i32) {
    %c0_i32 = arith.constant 0 : i32
    %c0_i32_0 = arith.constant 0 : i32
    return %arg0, %c0_i32 : i32, i32
  }
}

</mosaic_0001>

<bundles_post_ra>
// kernel: autoencoder_forward.1
= control target key start
LH: loop header
LB: loop body
LE: loop exit
PB: predicated region body
PF: predicated region fallthrough
CT: control target
= control target key end

     0   :  { %8 = vsyncpa [#allocation3], 0  ;;  %s266_s0 = inlined_call_operand.hbm [shape: f32[16,16], index: 0, kind: input, shape index: {}]   ;;  %s267_s1 = inlined_call_operand.vmem [shape: f32[1,16], index: 1, kind: input, shape index: {}]   ;;  %s268_s2 = inlined_call_operand.hbm [shape: f32[8,16], index: 2, kind: input, shape index: {}]   ;;  %s269_s3 = inlined_call_operand.hbm [shape: f32[8,16], index: 3, kind: output, shape index: {}]  }
   0x1   :  { %9 = vsyncpa [#allocation6], 0 }
   0x2   :  { %10 = vsyncpa [#allocation4], 0  ;;  %s227_s12 = smov [#allocation2]  }
   0x3   :  { %s16_s13 = sshll.u32 %s227_s12, 4  ;;  %s17_s13 = int_to_ptr.vmem [resolvable:$true] %s16_s13 }
   0x4   :  { %s169_s14 = scalar_lea.vmem %s17_s13, 256  ;;  %p174_p1 = scmp.lt.s32.totalorder %s17_s13, %s17_s13 }
   0x5   :  { %p170_p0 = scmp.ne.s32.totalorder %s17_s13, %s169_s14  ;;  %p175_p2 = scmp.lt.s32.totalorder %s169_s14, %s169_s14 }
   0x7   :  { %p176_p3 = por %p175_p2, %p174_p1 }
   0x9   :  { %p177_p4 = pnand %p176_p3, %p170_p0 }
   0xb   :  { %180 = shalt.err (!%p177_p4)
}
   0xc   :  { %s228_s15 = smov 128   ;;  %s229_s16 = smov 8  }
   0xd   :  { %22 = dma.hbm_to_vmem [thread:$0]  %s266_s0, 256, %s17_s13, [#allocation3], %s228_s15, %s228_s15, %s229_s16  }
   0xe   :  { %s230_s19 = smov [#allocation5]  }
   0xf   :  { %s31_s20 = sshll.u32 %s230_s19, 4  ;;  %s32_s20 = int_to_ptr.vmem [resolvable:$true] %s31_s20 }
  0x10   :  { %s189_s21 = scalar_lea.vmem %s32_s20, 128  ;;  %p194_p6 = scmp.lt.s32.totalorder %s32_s20, %s32_s20 }
  0x11   :  { %p190_p5 = scmp.ne.s32.totalorder %s32_s20, %s189_s21  ;;  %p195_p7 = scmp.lt.s32.totalorder %s189_s21, %s189_s21 }
  0x13   :  { %p196_p8 = por %p195_p7, %p194_p6 }
  0x15   :  { %p197_p9 = pnand %p196_p8, %p190_p5 }
  0x17   :  { %200 = shalt.err (!%p197_p9)
}
  0x18   :  { %34 = dma.hbm_to_vmem [thread:$0]  %s268_s2, 128, %s32_s20, [#allocation6]  }
  0x19   :  { %221 = dma.done.wait [#allocation3], 256  }
  0x1a   :  { %222 = vsyncadd [#allocation3], 4294967040 }
  0x1b   :  { %223 = dma.done.wait [#allocation6], 128  }
  0x1c   :  { %224 = vsyncadd [#allocation6], 4294967168  ;;  %v231_v0 = vmov 0.0   ;;  %vm232_vm0 = vmmov 0   ;;  %v43_v1 = vld [vmem:[#allocation2 + $0x8] sm:$0xff]  ;;  %v42_v2 = vld [vmem:[#allocation2] sm:$0xff] }
  0x1d   :  { %147 = vmatprep.subr.mxu0 %v231_v0  ;;  %151 = vmatprep.mubr.msk.f32.mxu0 %vm232_vm0, %v231_v0  ;;  %v41_v3 = vld [vmem:[#allocation5] sm:$0xff]  ;;  %vm51_vm1 = vcmask 130048   ;;  %v142_v4 = vld [vmem:[%s267_s1] ss:$0 sm:$0xff]  ;;  %s233_s2 = smov [#allocation7]  }
  0x1e   :  { %148 = vmatpush3.msra.mxu0 %v43_v1  ;;  %s132_s25 = sshll.u32 %s233_s2, 4  ;;  %s133_s25 = int_to_ptr.vmem [resolvable:$true] %s132_s25 }
  0x1f   :  { %149 = vmatprep.subr.mxu0 %v231_v0  ;;  %s201_s26 = scalar_lea.vmem %s133_s25, 128  ;;  %p206_p11 = scmp.lt.s32.totalorder %s133_s25, %s133_s25 }
  0x20   :  { %150 = vmatpush3.msra.mxu0 %v42_v2  ;;  %p202_p10 = scmp.ne.s32.totalorder %s133_s25, %s201_s26  ;;  %p207_p12 = scmp.lt.s32.totalorder %s201_s26, %s201_s26 }
  0x21   :  { %152 = vmatmul.mubr.msk.f32.vlgmr.msra.gmra.mxu0 %vm51_vm1, %v41_v3 }
  0x22   :  { %p208_p13 = por %p207_p12, %p206_p11 }
  0x24   :  { %p209_p0 = pnand %p208_p13, %p202_p10 }
  0xe1   :  { %v121_v5 = vpop.f32.mrf.mxu0 }
  0xe2   :  { %v122_v6 = vadd.f32 %v142_v4, %v121_v5 }
  0xe3   :  { %v153_v7 = vpop.f32.mrf.mxu0 }
  0xe4   :  { %125 = vst.msk [vmem:[#allocation7] sm:$0xff] %vm51_vm1, %v122_v6 }
  0xe5   :  { %212 = shalt.err (!%p209_p0)
}
  0xe6   :  { %135 = dma.vmem_to_hbm [thread:$0]  %s133_s25, 128, %s269_s3, [#allocation4]  }
  0xe7   :  { %225 = dma.done.wait [#allocation4], 128  }
  0xe8   :  { %226 = vsyncadd [#allocation4], 4294967168 }
  0xe9   :  { %139 = vsyncpa [#allocation3], 1 }
  0xea   :  { %140 = vsyncpa [#allocation6], 1 }
  0xeb   :  { %141 = vsyncpa [#allocation4], 1 }

</bundles_post_ra>
